<compile_context>
chip_gen: v7x
topology: tpu7x:2x2x1
jax: 0.10.0
libtpu: 0.0.40
codegen_flags: <defaults>
</compile_context>

<pallas_src>
import functools

import jax
import jax.numpy as jnp
from jax.experimental import pallas as pl
from jax.experimental.pallas import tpu as pltpu


def _monodepth_loss_kernel(x_ref, y_ref, mx_ref, my_ref, loss_ref, acc_ref,
                           *, shift_x, shift_y, inv_n):
    i = pl.program_id(1)                     # reduction axis (per core)

    @pl.when(i == 0)
    def _init():
        acc_ref[...] = jnp.zeros_like(acc_ref)

    x = x_ref[...].astype(jnp.float32)       # (tc, H*W) predicted depth slabs
    y = y_ref[...].astype(jnp.float32)       # (tc, H*W) target depth slabs

    # Neighbor at +1 (right) and +W (below) on the flattened lane axis.
    # roll by (size - s) == roll by -s :  rolled[..., j] = x[..., (j + s) % size]
    x_nx = pltpu.roll(x, shift=shift_x, axis=1)      # XLU lane roll (+1)
    x_ny = pltpu.roll(x, shift=shift_y, axis=1)      # XLU lane roll (+W)

    # Single fused accumulator:
    #   |x - y| / n_elems                       (L1 mean term)
    # + smoothness_weight * mask_x * |dzdx|     (wrap/row-boundary masked)
    # + smoothness_weight * mask_y * |dzdy|     (last-row masked)
    # Masks come pre-scaled by smoothness_weight; pure VPU work per step.
    acc_ref[...] += (jnp.abs(x - y) * jnp.float32(inv_n)
                     + mx_ref[...] * jnp.abs(x - x_nx)
                     + my_ref[...] * jnp.abs(x - x_ny))

    @pl.when(i == pl.num_programs(1) - 1)
    def _finalize():
        loss_ref[0, 0] = jnp.sum(acc_ref[...])


def _vmem_limit_bytes():
    """Chip-aware scoped-VMEM limit (conservative: <=1/2 of physical, <=48MiB)."""
    try:
        cap = int(pltpu.get_tpu_info().vmem_capacity_bytes)
    except Exception:  # not on TPU / field unavailable
        cap = 64 * 1024 * 1024
    return int(min(cap // 2, 48 * 1024 * 1024))


def _largest_divisor_at_most(n, cap):
    cap = max(1, min(n, cap))
    for d in range(cap, 0, -1):
        if n % d == 0:
            return d
    return 1


def monodepth_loss(output_depth, depth_map, smoothness_weight=0.1):
    """Equivalent of MonoDepthLoss.forward for NCHW inputs."""
    if output_depth.shape[2:] != depth_map.shape[2:]:
        # Bilinear resize with half-pixel centers == align_corners=False.
        # TODO(synk): the resize stays in XLA (jax.image.resize); fusing the
        # bilinear lerp into the kernel would avoid its extra HBM round trip.
        n_, c_ = output_depth.shape[:2]
        h_, w_ = depth_map.shape[2:]
        output_depth = jax.image.resize(
            output_depth, (n_, c_, h_, w_), method="bilinear", antialias=False)

    n, c, h, w = output_depth.shape
    nc, hw = n * c, h * w
    n_elems = nc * hw

    # ---- block sizing (chip-aware) ----
    vmem_limit = _vmem_limit_bytes()
    # Per-slab VMEM footprint: 2 pipeline buffers per input + the f32 accumulator.
    slab_bytes = hw * (2 * (output_depth.dtype.itemsize
                            + depth_map.dtype.itemsize) + 4)
    budget = int(0.75 * vmem_limit) - 2 * hw * 4       # headroom; minus masks
    tc = _largest_divisor_at_most(nc, max(1, budget // max(1, slab_bytes)))
    g = nc // tc
    # TODO(synk): a single slab larger than the VMEM budget (very large H*W)
    # is not tiled further along H*W (would need halo handling for the diffs).

    # Dual-TensorCore split (v7x): leading parallel axis over halves of the
    # slab blocks; collapses to 1 when g is odd or there is only one block.
    n_split = 2 if (g >= 2 and g % 2 == 0) else 1
    g2 = g // n_split

    # Free, contiguous reshape: (g, tc, H*W) -> leading dim tiled by the grid,
    # (tc, H*W) block equals the full trailing dims (no (8,128) constraint),
    # lane axis H*W is dense.  Inputs stay in their native dtype.
    x = output_depth.reshape(g, tc, hw)
    y = depth_map.reshape(g, tc, hw)

    # Precomputed, smoothness_weight-scaled masks (resident in VMEM, fetched once):
    #   mask_x: valid where the +1 neighbor is in the same row (col < W-1)
    #   mask_y: valid where the +W neighbor exists (row < H-1)
    sw = jnp.float32(smoothness_weight)
    pos = jnp.arange(hw, dtype=jnp.int32)
    mask_x = jnp.where(pos % w < w - 1, sw, jnp.float32(0.0)).reshape(1, hw)
    mask_y = jnp.where(pos < (h - 1) * w, sw, jnp.float32(0.0)).reshape(1, hw)

    kernel = functools.partial(
        _monodepth_loss_kernel,
        shift_x=hw - 1,          # +1 neighbor via roll
        shift_y=hw - w,          # +W neighbor via roll
        inv_n=1.0 / n_elems,
    )

    cost = pl.CostEstimate(
        flops=12 * n_elems,
        transcendentals=0,
        bytes_accessed=int(x.size * x.dtype.itemsize
                           + y.size * y.dtype.itemsize
                           + 2 * hw * 4 + 8 * n_split),
    )

    slab_map = lambda cc, i, g2=g2: (cc * g2 + i, 0, 0)
    const_map = lambda cc, i: (0, 0)

    partials = pl.pallas_call(
        kernel,
        out_shape=jax.ShapeDtypeStruct((n_split, 1), jnp.float32),
        grid_spec=pltpu.PrefetchScalarGridSpec(
            num_scalar_prefetch=0,
            grid=(n_split, g2),
            in_specs=[
                pl.BlockSpec((None, tc, hw), slab_map),   # predicted depth
                pl.BlockSpec((None, tc, hw), slab_map),   # target depth
                pl.BlockSpec((1, hw), const_map),         # mask_x (resident)
                pl.BlockSpec((1, hw), const_map),         # mask_y (resident)
            ],
            out_specs=pl.BlockSpec((1, 1), lambda cc, i: (cc, 0),
                                   memory_space=pltpu.SMEM),
            scratch_shapes=[
                pltpu.VMEM((tc, hw), jnp.float32),        # fused f32 accumulator
            ],
        ),
        compiler_params=pltpu.CompilerParams(
            dimension_semantics=("parallel", "arbitrary"),
            vmem_limit_bytes=vmem_limit,
        ),
        cost_estimate=cost,
    )(x, y, mask_x, mask_y)

    return jnp.sum(partials)


def _reference_loss(output_depth, depth_map, smoothness_weight=0.1):
    l1 = jnp.mean(jnp.abs(output_depth - depth_map))
    dzdx = jnp.sum(jnp.abs(output_depth[:, :, :, :-1] - output_depth[:, :, :, 1:]))
    dzdy = jnp.sum(jnp.abs(output_depth[:, :, :-1, :] - output_depth[:, :, 1:, :]))
    return l1 + smoothness_weight * (dzdx + dzdy)


if __name__ == "__main__":
    key = jax.random.PRNGKey(0)
    k1, k2 = jax.random.split(key)
    B, C, H, W = 2, 4, 16, 16
    output_depth = jax.random.uniform(k1, (B, C, H, W), dtype=jnp.float32)
    depth_map = jax.random.uniform(k2, (B, C, H, W), dtype=jnp.float32)

    loss = monodepth_loss(output_depth, depth_map, smoothness_weight=0.1)
    loss = jax.block_until_ready(loss)

    ref = _reference_loss(output_depth, depth_map, smoothness_weight=0.1)
    assert jnp.allclose(loss, ref, rtol=1e-5, atol=1e-5), (loss, ref)
    print("KERNEL_OK")
</pallas_src>

<mosaic_0001>
module attributes {stable_mosaic.version = 11 : i64} {
  func.func @_monodepth_loss_kernel(%arg0: i32, %arg1: i32, %arg2: memref<1x8x256xf32, #tpu.memory_space<vmem>>, %arg3: memref<1x8x256xf32, #tpu.memory_space<vmem>>, %arg4: memref<1x256xf32, #tpu.memory_space<vmem>>, %arg5: memref<1x256xf32, #tpu.memory_space<vmem>>, %arg6: memref<1x1xf32, #tpu.memory_space<smem>>, %arg7: memref<8x256xf32, #tpu.memory_space<vmem>>) attributes {dimension_semantics = [#tpu.dimension_semantics<parallel>, #tpu.dimension_semantics<arbitrary>], iteration_bounds = array<i64: 1, 1>, scalar_prefetch = 0 : i64, scratch_operands = 1 : i64, tpu.core_type = #tpu.core_type<tc>, window_params = [{transform_indices = @transform_0, window_bounds = array<i64: 1, 8, 256>}, {transform_indices = @transform_1, window_bounds = array<i64: 1, 8, 256>}, {pipeline_mode = #tpu.pipeline_mode<synchronous>, transform_indices = @transform_2, window_bounds = array<i64: 1, 256>}, {pipeline_mode = #tpu.pipeline_mode<synchronous>, transform_indices = @transform_3, window_bounds = array<i64: 1, 256>}, {transform_indices = @transform_4, window_bounds = array<i64: 1, 1>}]} {
    %c0_i32 = arith.constant 0 : i32
    %0 = arith.cmpi eq, %arg1, %c0_i32 : i32
    %1 = arith.extui %0 : i1 to i32
    %c0_i32_0 = arith.constant 0 : i32
    %2 = arith.cmpi ne, %1, %c0_i32_0 : i32
    scf.if %2 {
      %cst_16 = arith.constant 0.000000e+00 : f32
      %31 = vector.broadcast %cst_16 : f32 to vector<8x256xf32>
      %c0_17 = arith.constant 0 : index
      %c0_18 = arith.constant 0 : index
      %32 = vector.load %arg7[%c0_17, %c0_18] : memref<8x256xf32, #tpu.memory_space<vmem>>, vector<8x256xf32>
      tpu.vector_store %arg7[%c0_17, %c0_18], %31 {strides = array<i32>} : memref<8x256xf32, #tpu.memory_space<vmem>>, vector<8x256xf32>,
    } else {
    }
    %c0 = arith.constant 0 : index
    %c0_1 = arith.constant 0 : index
    %c0_2 = arith.constant 0 : index
    %3 = vector.load %arg2[%c0, %c0_1, %c0_2] : memref<1x8x256xf32, #tpu.memory_space<vmem>>, vector<1x8x256xf32>
    %4 = vector.shape_cast %3 : vector<1x8x256xf32> to vector<8x256xf32>
    %c0_3 = arith.constant 0 : index
    %c0_4 = arith.constant 0 : index
    %c0_5 = arith.constant 0 : index
    %5 = vector.load %arg3[%c0_3, %c0_4, %c0_5] : memref<1x8x256xf32, #tpu.memory_space<vmem>>, vector<1x8x256xf32>
    %6 = vector.shape_cast %5 : vector<1x8x256xf32> to vector<8x256xf32>
    %c255_i32 = arith.constant 255 : i32
    %7 = tpu.dynamic_rotate %4 by %c255_i32 dim 1 : vector<8x256xf32>, i32 -> vector<8x256xf32>
    %c240_i32 = arith.constant 240 : i32
    %8 = tpu.dynamic_rotate %4 by %c240_i32 dim 1 : vector<8x256xf32>, i32 -> vector<8x256xf32>
    %c0_6 = arith.constant 0 : index
    %c0_7 = arith.constant 0 : index
    %9 = vector.load %arg7[%c0_6, %c0_7] : memref<8x256xf32, #tpu.memory_space<vmem>>, vector<8x256xf32>
    %10 = arith.subf %4, %6 : vector<8x256xf32>
    %11 = math.absf %10 : vector<8x256xf32>
    %cst = arith.constant 4.8828125E-4 : f32
    %12 = vector.broadcast %cst : f32 to vector<8x256xf32>
    %13 = arith.mulf %11, %12 : vector<8x256xf32>
    %c0_8 = arith.constant 0 : index
    %c0_9 = arith.constant 0 : index
    %14 = vector.load %arg4[%c0_8, %c0_9] : memref<1x256xf32, #tpu.memory_space<vmem>>, vector<1x256xf32>
    %15 = arith.subf %4, %7 : vector<8x256xf32>
    %16 = math.absf %15 : vector<8x256xf32>
    %17 = vector.broadcast %14 : vector<1x256xf32> to vector<8x256xf32>
    %18 = arith.mulf %17, %16 : vector<8x256xf32>
    %19 = arith.addf %13, %18 : vector<8x256xf32>
    %c0_10 = arith.constant 0 : index
    %c0_11 = arith.constant 0 : index
    %20 = vector.load %arg5[%c0_10, %c0_11] : memref<1x256xf32, #tpu.memory_space<vmem>>, vector<1x256xf32>
    %21 = arith.subf %4, %8 : vector<8x256xf32>
    %22 = math.absf %21 : vector<8x256xf32>
    %23 = vector.broadcast %20 : vector<1x256xf32> to vector<8x256xf32>
    %24 = arith.mulf %23, %22 : vector<8x256xf32>
    %25 = arith.addf %19, %24 : vector<8x256xf32>
    %26 = arith.addf %9, %25 : vector<8x256xf32>
    %c0_12 = arith.constant 0 : index
    %c0_13 = arith.constant 0 : index
    %27 = vector.load %arg7[%c0_12, %c0_13] : memref<8x256xf32, #tpu.memory_space<vmem>>, vector<8x256xf32>
    tpu.vector_store %arg7[%c0_12, %c0_13], %26 {strides = array<i32>} : memref<8x256xf32, #tpu.memory_space<vmem>>, vector<8x256xf32>,
    %c0_i32_14 = arith.constant 0 : i32
    %28 = arith.cmpi eq, %arg1, %c0_i32_14 : i32
    %29 = arith.extui %28 : i1 to i32
    %c0_i32_15 = arith.constant 0 : i32
    %30 = arith.cmpi ne, %29, %c0_i32_15 : i32
    scf.if %30 {
      %c0_16 = arith.constant 0 : index
      %c0_17 = arith.constant 0 : index
      %31 = vector.load %arg7[%c0_16, %c0_17] : memref<8x256xf32, #tpu.memory_space<vmem>>, vector<8x256xf32>
      %32 = vector.shape_cast %31 : vector<8x256xf32> to vector<1x8x256xf32>
      %cst_18 = arith.constant dense<0.000000e+00> : vector<1xf32>
      %33 = vector.multi_reduction <add>, %32, %cst_18 [1, 2] : vector<1x8x256xf32> to vector<1xf32>
      %34 = vector.shape_cast %33 : vector<1xf32> to vector<1x1x1xf32>
      %35 = vector.extract %34[0, 0, 0] : f32 from vector<1x1x1xf32>
      %c0_19 = arith.constant 0 : index
      %c0_20 = arith.constant 0 : index
      %36 = memref.load %arg6[%c0_19, %c0_20] : memref<1x1xf32, #tpu.memory_space<smem>>
      memref.store %35, %arg6[%c0_19, %c0_20] : memref<1x1xf32, #tpu.memory_space<smem>>
    } else {
    }
    return
  }
  func.func @transform_0(%arg0: i32, %arg1: i32) -> (i32, i32, i32) {
    %c1_i32 = arith.constant 1 : i32
    %0 = arith.muli %arg0, %c1_i32 : i32
    %1 = arith.addi %0, %arg1 : i32
    %c0_i32 = arith.constant 0 : i32
    %c0_i32_0 = arith.constant 0 : i32
    %c0_i32_1 = arith.constant 0 : i32
    return %1, %c0_i32, %c0_i32_0 : i32, i32, i32
  }
  func.func @transform_1(%arg0: i32, %arg1: i32) -> (i32, i32, i32) {
    %c1_i32 = arith.constant 1 : i32
    %0 = arith.muli %arg0, %c1_i32 : i32
    %1 = arith.addi %0, %arg1 : i32
    %c0_i32 = arith.constant 0 : i32
    %c0_i32_0 = arith.constant 0 : i32
    %c0_i32_1 = arith.constant 0 : i32
    return %1, %c0_i32, %c0_i32_0 : i32, i32, i32
  }
  func.func @transform_2(%arg0: i32, %arg1: i32) -> (i32, i32) {
    %c0_i32 = arith.constant 0 : i32
    %c0_i32_0 = arith.constant 0 : i32
    %c0_i32_1 = arith.constant 0 : i32
    return %c0_i32, %c0_i32_0 : i32, i32
  }
  func.func @transform_3(%arg0: i32, %arg1: i32) -> (i32, i32) {
    %c0_i32 = arith.constant 0 : i32
    %c0_i32_0 = arith.constant 0 : i32
    %c0_i32_1 = arith.constant 0 : i32
    return %c0_i32, %c0_i32_0 : i32, i32
  }
  func.func @transform_4(%arg0: i32, %arg1: i32) -> (i32, i32) {
    %c0_i32 = arith.constant 0 : i32
    %c0_i32_0 = arith.constant 0 : i32
    return %arg0, %c0_i32 : i32, i32
  }
}

</mosaic_0001>

<bundles_post_ra>
// kernel: tpu_custom_call.1
= control target key start
LH: loop header
LB: loop body
LE: loop exit
PB: predicated region body
PF: predicated region fallthrough
CT: control target
= control target key end

     0   :  { %9 = vsyncpa [#allocation4], 0  ;;  %s301_s0 = inlined_call_operand.hbm [shape: f32[1,8,256], index: 0, kind: input, shape index: {}]   ;;  %s302_s1 = inlined_call_operand.hbm [shape: f32[1,8,256], index: 1, kind: input, shape index: {}]   ;;  %s303_s2 = inlined_call_operand.vmem [shape: f32[1,256], index: 2, kind: input, shape index: {}]   ;;  %s304_s3 = inlined_call_operand.vmem [shape: f32[1,256], index: 3, kind: input, shape index: {}]   ;;  %s305_s4 = inlined_call_operand.hbm [shape: f32[1,1], index: 4, kind: output, shape index: {}]  }
   0x1   :  { %10 = vsyncpa [#allocation7], 0 }
   0x2   :  { %11 = vsyncpa [#allocation5], 0  ;;  %s229_s15 = smov [#allocation3]   ;;  %s230_s17 = smov [#allocation6]  }
   0x3   :  { %s22_s16 = sshll.u32 %s229_s15, 4  ;;  %s36_s18 = sshll.u32 %s230_s17, 4  ;;  %s23_s16 = int_to_ptr.vmem [resolvable:$true] %s22_s16  ;;  %s37_s18 = int_to_ptr.vmem [resolvable:$true] %s36_s18 }
   0x4   :  { %s169_s21 = scalar_lea.hbm %s301_s0, 256 }
   0x5   :  { %p170_p0 = scmp.ne.s32.totalorder %s301_s0, %s169_s21  ;;  %p173_p1 = scmp.lt.u32.totalorder %s169_s21, %s301_s0 }
   0x7   :  { %p175_p2 = pnand %p173_p1, %p170_p0 }
   0x9   :  { %178 = shalt.err (!%p175_p2)
}
   0xa   :  { %s179_s26 = scalar_lea.vmem %s23_s16, 256  ;;  %p184_p4 = scmp.lt.s32.totalorder %s23_s16, %s23_s16 }
   0xb   :  { %p180_p3 = scmp.ne.s32.totalorder %s23_s16, %s179_s26  ;;  %p185_p5 = scmp.lt.s32.totalorder %s179_s26, %s179_s26 }
   0xd   :  { %p186_p6 = por %p185_p5, %p184_p4 }
   0xf   :  { %p187_p7 = pnand %p186_p6, %p180_p3 }
  0x11   :  { %190 = shalt.err (!%p187_p7)
}
  0x12   :  { %25 = dma.hbm_to_vmem [thread:$0]  %s301_s0, 256, %s23_s16, [#allocation4]  }
  0x13   :  { %s191_s5 = scalar_lea.hbm %s302_s1, 256 }
  0x14   :  { %p192_p8 = scmp.ne.s32.totalorder %s302_s1, %s191_s5  ;;  %p195_p9 = scmp.lt.u32.totalorder %s191_s5, %s302_s1 }
  0x16   :  { %p197_p10 = pnand %p195_p9, %p192_p8 }
  0x18   :  { %200 = shalt.err (!%p197_p10)
}
  0x19   :  { %s201_s10 = scalar_lea.vmem %s37_s18, 256  ;;  %p206_p12 = scmp.lt.s32.totalorder %s37_s18, %s37_s18 }
  0x1a   :  { %p202_p11 = scmp.ne.s32.totalorder %s37_s18, %s201_s10  ;;  %p207_p13 = scmp.lt.s32.totalorder %s201_s10, %s201_s10 }
  0x1c   :  { %p208_p0 = por %p207_p13, %p206_p12 }
  0x1e   :  { %p209_p1 = pnand %p208_p0, %p202_p11 }
  0x20   :  { %212 = shalt.err (!%p209_p1)
}
  0x21   :  { %39 = dma.hbm_to_vmem [thread:$0]  %s302_s1, 256, %s37_s18, [#allocation7]  }
  0x22   :  { %223 = dma.done.wait [#allocation4], 256  }
  0x23   :  { %224 = vsyncadd [#allocation4], 4294967040 }
  0x24   :  { %225 = dma.done.wait [#allocation7], 256  }
  0x25   :  { %226 = vsyncadd [#allocation7], 4294967040  ;;  %v58_v0 = vld [vmem:[#allocation3] sm:$0xff]  ;;  %s231_s12 = smov 112   ;;  %s232_s13 = smov 127   ;;  %v59_v1 = vld [vmem:[#allocation3 + $0x8] sm:$0xff]  ;;  %v66_v2 = vlaneseq }
  0x26   :  { %71 = vrot.lane.b32.xlu1 %v58_v0, %s231_s12  ;;  %62 = vrot.lane.b32.xlu0 %v58_v0, %s232_s13  ;;  %v60_v4 = vld [vmem:[#allocation6] sm:$0xff]  ;;  %v61_v5 = vld [vmem:[#allocation6 + $0x8] sm:$0xff]  ;;  %v86_v12 = vld [vmem:[%s303_s2] sm:$0x3]  ;;  %s213_s18 = scalar_lea.hbm %s305_s4, 16 }
  0x27   :  { %v93_v3 = vshrl.u32 %v66_v2, 7  ;;  %v67_v6 = vand.u32 127, %v66_v2  ;;  %v80_v10 = vsub.f32 %v58_v0, %v60_v4  ;;  %v81_v11 = vsub.f32 %v59_v1, %v61_v5  ;;  %v106_v19 = vld [vmem:[%s304_s3] sm:$0x3]  ;;  %p214_p2 = scmp.ne.s32.totalorder %s305_s4, %s213_s18  ;;  %p217_p3 = scmp.lt.u32.totalorder %s213_s18, %s305_s4 }
  0x29   :  { %v94_v9 = vsub.s32 0, %v93_v3  ;;  %vm75_vm0 = vcmp.lt.s32.totalorder %v67_v6, 112  ;;  %vm68_vm1 = vcmp.lt.s32.totalorder %v67_v6, 127  ;;  %v98_v13 = vsub.s32 1, %v93_v3  ;;  %p219_p4 = pnand %p217_p3, %p214_p2 }
  0x2a   :  { %73 = vrot.lane.b32.xlu1 %v59_v1, %s231_s12  ;;  %64 = vrot.lane.b32.xlu0 %v59_v1, %s232_s13  ;;  %v82_v17 = vand.u32 2147483647, %v80_v10  ;;  %v83_v18 = vand.u32 2147483647, %v81_v11 }
  0x2b   :  { %v95_v15 = vrot.slane %v86_v12, %v94_v9  ;;  %v99_v28 = vrot.slane %v86_v12, %v98_v13  ;;  %v115_v29 = vrot.slane %v106_v19, %v94_v9  ;;  %v119_v33 = vrot.slane %v106_v19, %v98_v13 }
  0x2c   :  { %v84_v32 = vmul.f32 0.00048828125, %v82_v17  ;;  %v85_v36 = vmul.f32 0.00048828125, %v83_v18 }
  0x98   :  { %v72_v7 = vpop.permute.xlu1 %71  ;;  %v63_v8 = vpop.permute.xlu0 %62 }
  0x9c   :  { %v74_v14 = vpop.permute.xlu1 %73  ;;  %v65_v16 = vpop.permute.xlu0 %64 }
  0x9d   :  { %v76_v20 = vsel %vm75_vm0, %v72_v7, %v74_v14  ;;  %v77_v21 = vsel %vm75_vm0, %v74_v14, %v72_v7  ;;  %v69_v22 = vsel %vm68_vm1, %v63_v8, %v65_v16  ;;  %v70_v23 = vsel %vm68_vm1, %v65_v16, %v63_v8 }
  0x9e   :  { %v107_v24 = vsub.f32 %v58_v0, %v76_v20  ;;  %v108_v25 = vsub.f32 %v59_v1, %v77_v21  ;;  %v87_v26 = vsub.f32 %v58_v0, %v69_v22  ;;  %v88_v27 = vsub.f32 %v59_v1, %v70_v23 }
  0xa0   :  { %v109_v30 = vand.u32 2147483647, %v107_v24  ;;  %v89_v31 = vand.u32 2147483647, %v87_v26  ;;  %v110_v34 = vand.u32 2147483647, %v108_v25 }
  0xa1   :  { %v90_v35 = vand.u32 2147483647, %v88_v27 }
  0xa2   :  { %v102_v37 = vmul.f32 %v95_v15, %v89_v31  ;;  %v122_v39 = vmul.f32 %v115_v29, %v109_v30  ;;  %v123_v41 = vmul.f32 %v119_v33, %v110_v34 }
  0xa3   :  { %v103_v38 = vmul.f32 %v99_v28, %v90_v35 }
  0xa4   :  { %v104_v40 = vadd.f32 %v102_v37, %v84_v32 }
  0xa5   :  { %v105_v42 = vadd.f32 %v103_v38, %v85_v36 }
  0xa6   :  { %v124_v43 = vadd.f32 %v122_v39, %v104_v40 }
  0xa7   :  { %v125_v44 = vadd.f32 %v123_v41, %v105_v42 }
  0xa9   :  { %v135_v45 = vadd.f32 %v125_v44, %v124_v43 }
  0xab   :  { %136 = vadd.xlane.f32.xlu0 %v135_v45 }
 0x138   :  { %v137_v46 = vpop.xlane.xlu0 %136 }
 0x139   :  { %v138_v47 = vrot.slane %v137_v46, 4 }
 0x13b   :  { %v139_v48 = vadd.f32 %v138_v47, %v137_v46 }
 0x13d   :  { %v140_v49 = vrot.slane %v139_v48, 2 }
 0x13f   :  { %v141_v50 = vadd.f32 %v140_v49, %v139_v48 }
 0x141   :  { %v142_v51 = vrot.slane %v141_v50, 1 }
 0x143   :  { %v143_v52 = vadd.f32 %v142_v51, %v141_v50 }
 0x145   :  { %162 = vpush %v143_v52 }
 0x176   :  { %s163_s2 = spop %162 }
 0x177   :  { %146 = sst [smem:[#allocation8]] %s163_s2 }
 0x178   :  { %222 = shalt.err (!%p219_p4)
}
 0x179   :  { %s233_s23 = smov [#allocation8]  }
 0x17a   :  { %154 = dma.smem_to_hbm %s233_s23, 16, %s305_s4, [#allocation5]  }
 0x17b   :  { %227 = dma.done.wait [#allocation5], 16  }
 0x17c   :  { %228 = vsyncadd [#allocation5], 4294967280 }
 0x17d   :  { %158 = sfence }
 0x17e   :  { %159 = vsyncpa [#allocation4], 1 }
 0x17f   :  { %160 = vsyncpa [#allocation7], 1 }
 0x180   :  { %161 = vsyncpa [#allocation5], 1 }

</bundles_post_ra>
